<compile_context>
chip_gen: v5e
topology: v5e:2x2
jax: 0.10.0
libtpu: 0.0.40
codegen_flags: <defaults>
</compile_context>

<pallas_src>
import numpy as np
import jax
import jax.numpy as jnp
from jax.experimental import pallas as pl
from jax.experimental.pallas import tpu as pltpu


def get_position_encoding(seq_len: int, d: int, n: int = 10000) -> np.ndarray:
    """Sinusoidal table, identical to the PyTorch module's get_position_encoding."""
    P = np.zeros((seq_len, d), dtype=np.float64)
    for k in range(seq_len):
        for i in range(d // 2):
            denominator = np.power(n, 2 * i / d)
            P[k, 2 * i] = np.sin(k / denominator)
            P[k, 2 * i + 1] = np.cos(k / denominator)
    return P.astype(np.float32)


def _embed_row_kernel(ids_ref, word_row_ref, pos_row_ref, out_row_ref):
    # ids_ref lives in SMEM (scalar prefetch) and is consumed only by the
    # index_maps below; the kernel body is a pure (1, 1, D) row add.
    del ids_ref
    out_row_ref[...] = word_row_ref[...] + pos_row_ref[...]


def position_embedding_fixed_weights(tokens, word_table, pos_table):
    """tokens: (B, S) int32; word_table: (V, D) f32; pos_table: (>=S, D) f32."""
    B, S = tokens.shape
    V, D = word_table.shape

    # Flatten ids for scalar prefetch; lift tables/output to (rows, 1, D) so
    # every block's minor-two dims equal the full array dims.
    ids_flat = tokens.reshape(B * S).astype(jnp.int32)
    word_3d = word_table.reshape(V, 1, D)
    pos_3d = pos_table[:S].reshape(S, 1, D)  # positions = range(S)

    # TODO(synk): PyTorch nn.Embedding raises on out-of-range ids; here an
    # out-of-range id would trip the DMA bounds check instead of being checked
    # explicitly.

    out_flat = pl.pallas_call(
        _embed_row_kernel,
        out_shape=jax.ShapeDtypeStruct((B * S, 1, D), jnp.float32),
        grid_spec=pltpu.PrefetchScalarGridSpec(
            num_scalar_prefetch=1,            # ids -> SMEM, feeds index_maps
            grid=(B * S,),                    # one token row per grid step
            in_specs=[
                # Gather: DMA only row ids[i] of the word table from HBM.
                pl.BlockSpec((1, 1, D), lambda i, ids: (ids[i], 0, 0)),
                # Position row for flat token i is (i % S).
                pl.BlockSpec((1, 1, D), lambda i, ids: (i % S, 0, 0)),
            ],
            out_specs=pl.BlockSpec((1, 1, D), lambda i, ids: (i, 0, 0)),
        ),
        compiler_params=pltpu.CompilerParams(
            dimension_semantics=("parallel",),  # shard grid across TCs on v7x
        ),
    )(ids_flat, word_3d, pos_3d)

    return out_flat.reshape(B, S, D)


if __name__ == "__main__":
    # Small shapes consistent with the module's forward.
    sequence_length = 8
    vocab_size = 32
    output_dim = 32
    batch = 2

    # Deterministic fixed (non-trainable) sinusoidal tables, as in __init__.
    word_table = jnp.asarray(get_position_encoding(vocab_size, output_dim))
    pos_table = jnp.asarray(get_position_encoding(sequence_length, output_dim))

    # Deterministic example token ids.
    key = jax.random.PRNGKey(0)
    tokens = jax.random.randint(
        key, (batch, sequence_length), minval=0, maxval=vocab_size, dtype=jnp.int32
    )

    out = position_embedding_fixed_weights(tokens, word_table, pos_table)
    out = jax.block_until_ready(out)

    # Reference check in plain JAX (same semantics as the PyTorch forward).
    ref = word_table[tokens] + pos_table[jnp.arange(sequence_length)][None, :, :]
    np.testing.assert_allclose(np.asarray(out), np.asarray(ref), rtol=1e-5, atol=1e-5)

    print("KERNEL_OK")
</pallas_src>

<mosaic_0001>
module attributes {stable_mosaic.version = 11 : i64} {
  func.func @_embed_row_kernel(%arg0: i32, %arg1: memref<16xi32, #tpu.memory_space<smem>>, %arg2: memref<1x1x32xf32, #tpu.memory_space<vmem>>, %arg3: memref<1x1x32xf32, #tpu.memory_space<vmem>>, %arg4: memref<1x1x32xf32, #tpu.memory_space<vmem>>) attributes {dimension_semantics = [#tpu.dimension_semantics<parallel>], iteration_bounds = array<i64: 16>, scalar_prefetch = 1 : i64, scratch_operands = 0 : i64, tpu.core_type = #tpu.core_type<tc>, window_params = [{transform_indices = @transform_0, window_bounds = array<i64: 1, 1, 32>}, {transform_indices = @transform_1, window_bounds = array<i64: 1, 1, 32>}, {transform_indices = @transform_2, window_bounds = array<i64: 1, 1, 32>}]} {
    %c0 = arith.constant 0 : index
    %c0_0 = arith.constant 0 : index
    %c0_1 = arith.constant 0 : index
    %0 = vector.load %arg2[%c0, %c0_0, %c0_1] : memref<1x1x32xf32, #tpu.memory_space<vmem>>, vector<1x1x32xf32>
    %c0_2 = arith.constant 0 : index
    %c0_3 = arith.constant 0 : index
    %c0_4 = arith.constant 0 : index
    %1 = vector.load %arg3[%c0_2, %c0_3, %c0_4] : memref<1x1x32xf32, #tpu.memory_space<vmem>>, vector<1x1x32xf32>
    %2 = arith.addf %0, %1 : vector<1x1x32xf32>
    %c0_5 = arith.constant 0 : index
    %c0_6 = arith.constant 0 : index
    %c0_7 = arith.constant 0 : index
    %3 = vector.load %arg4[%c0_5, %c0_6, %c0_7] : memref<1x1x32xf32, #tpu.memory_space<vmem>>, vector<1x1x32xf32>
    tpu.vector_store %arg4[%c0_5, %c0_6, %c0_7], %2 {strides = array<i32>} : memref<1x1x32xf32, #tpu.memory_space<vmem>>, vector<1x1x32xf32>,
    return
  }
  func.func @transform_0(%arg0: i32, %arg1: memref<16xi32, #tpu.memory_space<smem>>) -> (i32, i32, i32) {
    %0 = arith.index_cast %arg0 : i32 to index
    %1 = memref.load %arg1[%0] : memref<16xi32, #tpu.memory_space<smem>>
    %c0_i32 = arith.constant 0 : i32
    %c0_i32_0 = arith.constant 0 : i32
    %c0_i32_1 = arith.constant 0 : i32
    return %1, %c0_i32, %c0_i32_0 : i32, i32, i32
  }
  func.func @transform_1(%arg0: i32, %arg1: memref<16xi32, #tpu.memory_space<smem>>) -> (i32, i32, i32) {
    %c8_i32 = arith.constant 8 : i32
    %c0_i32 = arith.constant 0 : i32
    %0 = arith.cmpi eq, %c8_i32, %c0_i32 : i32
    %c1_i32 = arith.constant 1 : i32
    %1 = arith.select %0, %c1_i32, %c8_i32 : i32
    %2 = arith.remsi %arg0, %1 : i32
    %c0_i32_0 = arith.constant 0 : i32
    %3 = arith.cmpi ne, %2, %c0_i32_0 : i32
    %c0_i32_1 = arith.constant 0 : i32
    %4 = arith.cmpi slt, %2, %c0_i32_1 : i32
    %c0_i32_2 = arith.constant 0 : i32
    %5 = arith.cmpi slt, %1, %c0_i32_2 : i32
    %6 = arith.xori %4, %5 : i1
    %7 = arith.andi %6, %3 : i1
    %8 = arith.addi %2, %1 : i32
    %9 = arith.select %7, %8, %2 : i32
    %c0_i32_3 = arith.constant 0 : i32
    %c0_i32_4 = arith.constant 0 : i32
    %c0_i32_5 = arith.constant 0 : i32
    return %9, %c0_i32_3, %c0_i32_4 : i32, i32, i32
  }
  func.func @transform_2(%arg0: i32, %arg1: memref<16xi32, #tpu.memory_space<smem>>) -> (i32, i32, i32) {
    %c0_i32 = arith.constant 0 : i32
    %c0_i32_0 = arith.constant 0 : i32
    %c0_i32_1 = arith.constant 0 : i32
    return %arg0, %c0_i32, %c0_i32_0 : i32, i32, i32
  }
}

</mosaic_0001>

<bundles_post_ra>
// kernel: tpu_custom_call.1
= control target key start
LH: loop header
LB: loop body
LE: loop exit
PB: predicated region body
PF: predicated region fallthrough
CT: control target
= control target key end

     0   :  { %s664_s15 = smov [#allocation3]   ;;  %s937_s0 = inlined_call_operand.hbm [shape: s32[16], index: 0, kind: input, shape index: {}]   ;;  %s938_s1 = inlined_call_operand.hbm [shape: f32[32,1,32], index: 1, kind: input, shape index: {}]   ;;  %s939_s2 = inlined_call_operand.hbm [shape: f32[8,1,32], index: 2, kind: input, shape index: {}]   ;;  %s940_s3 = inlined_call_operand.hbm [shape: f32[16,1,32], index: 3, kind: output, shape index: {}]  }
   0x1   :  { %s9_s14 = sshll.u32 %s937_s0, 4  ;;  %s10_s14 = int_to_ptr.hbm [resolvable:$true] %s9_s14 }
   0x2   :  { %12 = dma.hbm_to_smem %s10_s14, 16, %s664_s15, [#allocation2] }
   0x3   :  { %610 = dma.done.wait [#allocation2], 16 }
   0x4   :  { %611 = vsyncadd [#allocation2], 4294967280 }
   0x5   :  { %15 = sfence }
   0x6   :  { %16 = vsyncpa [#allocation5], 0 }
   0x7   :  { %18 = vsyncpa [#allocation5 + $0x1], 0 }
   0x8   :  { %19 = vsyncpa [#allocation8], 0 }
   0x9   :  { %21 = vsyncpa [#allocation8 + $0x1], 0 }
   0xa   :  { %22 = vsyncpa [#allocation6], 0 }
   0xb   :  { %24 = vsyncpa [#allocation6 + $0x1], 0  ;;  %s688_s16 = smov 0   ;;  %s690_s17 = smov 0  }
   0xc   :  { %s692_s18 = smov 0   ;;  %s694_s19 = smov 0  }
   0xd   :  { %s696_s0 = smov 0   ;;  %s698_s20 = smov 0  }
   0xe   :  { %s700_s21 = smov 0   ;;  %s702_s22 = smov 0  }
   0xf   :  { %s704_s23 = smov 0   ;;  %s706_s24 = smov 0  }
  0x10 LB: > { %947 = sst [smem:[#allocation16_spill]] %s634_s18  ;;  %s737_s25 = sadd.s32 4294967295, %s662_s24   ;;  %s662_s24 = sphi %s706_s24, %s976_s24   ;;  %s658_s23 = sphi %s704_s23, %s968_s23   ;;  %s654_s22 = sphi %s702_s22, %s975_s22   ;;  %s650_s21 = sphi %s700_s21, %s974_s21   ;;  %s646_s20 = sphi %s698_s20, %s973_s20   ;;  %s642_s0 = sphi %s696_s0, %s972_s0   ;;  %s638_s19 = sphi %s694_s19, %s971_s19   ;;  %s634_s18 = sphi %s692_s18, %s966_s18   ;;  %s630_s17 = sphi %s690_s17, %s970_s17   ;;  %s626_s16 = sphi %s688_s16, %s969_s16  }
  0x11   : > { %948 = sst [smem:[#allocation17_spill]] %s658_s23  ;;  %s351_s26 = sadd.s32 4294967294, %s662_s24  }
  0x12   : > { %s741_s27 = sadd.s32 1, %s662_s24   ;;  %s34_s28 = sld [smem:[#allocation3 + %s662_s24]] }
  0x13   : > { %s35_s29 = sld [smem:[#allocation3 + %s741_s27]]  ;;  %s39_s30 = sadd.s32 1, %s658_s23 }
  0x14   : > { %p46_p0 = scmp.ne.s32.totalorder %s658_s23, %s654_s22  ;;  %p946_p1 = scmp.eq.s32.totalorder %s662_s24, 0 }
  0x15   : > { %p52_p2 = scmp.ne.s32.totalorder %s654_s22, %s650_s21  ;;  %p945_p3 = scmp.eq.s32.totalorder %s737_s25, 0 }
  0x16   : > { %p753_p4 = por %p946_p1, %p46_p0  ;;  %s112_s5 = ssub.s32 %s662_s24, %s741_s27 }
  0x17   : > { %p761_p5 = por %p945_p3, %p52_p2  ;;  %p113_p6 = scmp.eq.s32.totalorder %s112_s5, 0 }
  0x18   : > { %s115_s7 = sadd.s32 1, %s634_s18  ;;  %p125_p7 = scmp.ne.s32.totalorder %s634_s18, %s630_s17 }
  0x19   : > { %s36_s8 = ssub.s32 %s34_s28, %s35_s29  ;;  %p126_p8 = scmp.eq.s32.totalorder %s737_s25, 15 }
  0x1a   : > { %p37_p9 = scmp.eq.s32.totalorder %s36_s8, 0  ;;  %p131_p10 = scmp.ne.s32.totalorder %s630_s17, %s626_s16 }
  0x1b   : > { %s772_s9 = scalar_select %p113_p6, %s634_s18, %s115_s7  }
  0x1c   : > { %s775_s10 = scalar_select %p37_p9, %s658_s23, %s39_s30  }
  0x1d   : > { %951 = sst [smem:[#allocation18_spill]] %s772_s9  ;;  %p777_p11 = por %p126_p8, %p125_p7 }
  0x1e   : > { %952 = sst [smem:[#allocation19_spill]] %s775_s10  ;;  %p132_p12 = scmp.eq.s32.totalorder %s351_s26, 15 }
  0x1f   : > { %p944_p13 = scmp.lt.s32.totalorder %s662_s24, 16  ;;  %s152_s13 = sand.u32 1, %s658_s23  }
  0x20   : > { %p782_p0 = por %p132_p12, %p131_p10  ;;  %s155_s21 = scalar_lea.vmem [#allocation4], %s152_s13 }
  0x21   : > { %s366_s14 = scalar_select %p753_p4, [#allocation3], [#allocation10] }
  0x22   : > { %s954_s12 = scalar_select %p782_p0, 1, 0 }
  0x23   : > { %s367_s15 = scalar_select %p753_p4, %s662_s24, 0 }
  0x24   : > { %955 = sst [smem:[#allocation20_spill]] %s954_s12  ;;  %s978_s14 = smov (!%p944_p13, %s366_s14), [#allocation11] }
  0x25   : > { %s980_s15 = smov (!%p944_p13, %s367_s15), 0  ;;  %s163_s28 = sshll.u32 %s155_s21, 4  ;;  %s164_s28 = int_to_ptr.vmem [resolvable:$true] %s163_s28 }
  0x26   : > { %p800_p2 = pnand %p944_p13, %p753_p4  ;;  %s156_s29 = sld [smem:[%s978_s14 + %s980_s15]] }
  0x27   : > { %p363_p6 = scmp.ge.s32.totalorder %s662_s24, 1  ;;  %p197_p7 = scmp.lt.s32.totalorder %s662_s24, 17 }
  0x28   : > { %p62_p9 = scmp.lt.s32.totalorder %s662_s24, 0  ;;  %s63_s21 = ssub.s32 0, %s662_s24 }
  0x29   : > { %p806_p8 = pnand %p363_p6, %p197_p7  ;;  %s352_s10 = smin.u32 %s662_s24, %s63_s21 }
  0x2a   : > { %s153_s23 = scalar_lea.sflag [#allocation5], %s152_s13  ;;  %p486_p10 = pneg %p800_p2 }
  0x2b   : > { %s489_s12 = scalar_lea.hbm %s938_s1, 32 }
  0x2c   : > { %s159_s8 = scalar_lea.hbm %s938_s1, %s156_s29 }
  0x2d   : > { %s161_s4 = sshll.u32 %s159_s8, 4  ;;  %s162_s4 = int_to_ptr.hbm [resolvable:$true] %s161_s4 }
  0x2e   : > { %s482_s9 = sshra.s32 %s162_s4, 4  ;;  %s483_s9 = int_to_ptr.hbm [resolvable:$true] %s482_s9 }
  0x2f   : > { %s484_s14 = scalar_lea.hbm %s483_s9, 1  ;;  %p490_p7 = scmp.lt.s32.totalorder %s483_s9, %s938_s1 }
  0x30   : > { %p485_p4 = scmp.ne.s32.totalorder %s483_s9, %s484_s14  ;;  %p491_p13 = scmp.lt.s32.totalorder %s489_s12, %s484_s14 }
  0x32   : > { %p487_p12 = pnand %p486_p10, %p485_p4  ;;  %p492_p3 = por %p491_p13, %p490_p7 }
  0x34   : > { %p488_p6 = pneg %p487_p12 }
  0x36   : > { %p493_p1 = pnand %p492_p3, %p488_p6 }
  0x38   : > { %496 = shalt.err (!%p493_p1)
}
  0x39   : > { %379 = dma.hbm_to_vmem [thread:$0]  (!%p800_p2), %s162_s4, 16, %s164_s28, %s153_s23  }
  0x3a   : > { %s65_s18 = sand.u32 7, %s352_s10   ;;  %p74_p4 = scmp.lt.s32.totalorder %s741_s27, 0 }
  0x3b   : > { %s66_s9 = ssub.s32 0, %s65_s18  ;;  %s75_s12 = ssub.s32 0, %s741_s27 }
  0x3c   : > { %s982_s9 = smov (!%p62_p9, %s66_s9), %s65_s18  ;;  %s355_s13 = smin.u32 %s75_s12, %s741_s27 }
  0x3d   : > { %s89_s26 = sadd.s32 1, %s646_s20  ;;  %p354_p1 = scmp.lt.s32.totalorder %s982_s9, 0 }
  0x3e   : > { %s72_s7 = sadd.s32 8, %s982_s9  ;;  %s77_s8 = sand.u32 7, %s355_s13  }
  0x3f   : > { %p96_p3 = scmp.ne.s32.totalorder %s646_s20, %s642_s0  ;;  %s984_s7 = smov (!%p354_p1, %s72_s7), %s982_s9 }
  0x40   : > { %s78_s21 = ssub.s32 0, %s77_s8  ;;  %p958_p13 = scmp.eq.s32.totalorder %s662_s24, 0 }
  0x41   : > { %s986_s21 = smov (!%p74_p4, %s78_s21), %s77_s8  ;;  %p102_p10 = scmp.ne.s32.totalorder %s642_s0, %s638_s19 }
  0x42   : > { %p836_p2 = por %p96_p3, %p958_p13  ;;  %s170_s10 = sand.u32 1, %s646_s20  }
  0x43   : > { %p357_p9 = scmp.lt.s32.totalorder %s986_s21, 0  ;;  %s84_s28 = sadd.s32 8, %s986_s21 }
  0x44   : > { %p960_p12 = scmp.eq.s32.totalorder %s737_s25, 0  ;;  %s188_s5 = scalar_lea.hbm %s939_s2, %s984_s7 }
  0x45   : > { %s988_s28 = smov (!%p357_p9, %s84_s28), %s986_s21  ;;  %s190_s18 = sshll.u32 %s188_s5, 4  ;;  %s191_s18 = int_to_ptr.hbm [resolvable:$true] %s190_s18 }
  0x46   : > { %p847_p6 = por %p102_p10, %p960_p12  ;;  %s86_s29 = ssub.s32 %s984_s7, %s988_s28 }
  0x47   : > { %p87_p7 = scmp.eq.s32.totalorder %s86_s29, 0  ;;  %s173_s9 = scalar_lea.vmem [#allocation7], %s170_s10 }
  0x48   : > { %s192_s12 = sshll.u32 %s173_s9, 4  ;;  %p962_p4 = scmp.lt.s32.totalorder %s662_s24, 16  ;;  %s193_s12 = int_to_ptr.vmem [resolvable:$true] %s192_s12 }
  0x49   : > { %s863_s13 = scalar_select %p87_p7, %s646_s20, %s89_s26  }
  0x4a   : > { %p858_p1 = pnand %p962_p4, %p836_p2  ;;  %s171_s8 = scalar_lea.sflag [#allocation8], %s170_s10 }
  0x4b   : > { %s512_s21 = sshra.s32 %s191_s18, 4  ;;  %s519_s28 = scalar_lea.hbm %s939_s2, 8  ;;  %s513_s21 = int_to_ptr.hbm [resolvable:$true] %s512_s21 }
  0x4c   : > { %s514_s14 = scalar_lea.hbm %s513_s21, 1  ;;  %p516_p13 = pneg %p858_p1 }
  0x4d   : > { %p515_p3 = scmp.ne.s32.totalorder %s513_s21, %s514_s14  ;;  %p520_p2 = scmp.lt.s32.totalorder %s513_s21, %s939_s2 }
  0x4e   : > { %p521_p12 = scmp.lt.s32.totalorder %s519_s28, %s514_s14 }
  0x4f   : > { %p517_p10 = pnand %p516_p13, %p515_p3 }
  0x50   : > { %p522_p7 = por %p521_p12, %p520_p2 }
  0x51   : > { %p518_p9 = pneg %p517_p10 }
  0x53   : > { %p523_p4 = pnand %p522_p7, %p518_p9 }
  0x55   : > { %526 = shalt.err (!%p523_p4)
}
  0x56   : > { %382 = dma.hbm_to_vmem [thread:$0]  (!%p858_p1), %s191_s18, 16, %s193_s12, %s171_s8  }
  0x57   : > { %201 = sbr.rel (%p806_p8) target bundleno = 111 (0x6f), region = 28  ;;  %s203_s26 = sand.u32 (!%p806_p8), 1, %s654_s22  }
  0x58   : > { %s204_s10 = scalar_lea.sflag (!%p806_p8), [#allocation5], %s203_s26  ;;  %s206_s29 = scalar_lea.vmem (!%p806_p8), [#allocation4], %s203_s26 }
  0x5c   : > { %613 = dma.done.wait (%p761_p5), %s204_s10, 16  }
  0x5d   : > { %615 = vsyncadd (%p761_p5), %s204_s10, 4294967280  ;;  %s212_s9 = sand.u32 1, %s642_s0  }
  0x5e   : > { %s213_s21 = scalar_lea.sflag [#allocation8], %s212_s9  ;;  %s215_s14 = scalar_lea.vmem [#allocation7], %s212_s9 }
  0x5f   : > { %617 = dma.done.wait (%p847_p6), %s213_s21, 16  }
  0x60   : > { %619 = vsyncadd (%p847_p6), %s213_s21, 4294967280  ;;  %s237_s30 = sand.u32 1, %s630_s17   ;;  %s266_s19 = scalar_lea.hbm %s940_s3, %s737_s25  ;;  %v252_v0 = vld [vmem:[%s206_s29] sm:$0x1]  ;;  %vm255_vm0 = vcmask 253952  }
  0x61   : > { %s238_s6 = scalar_lea.vmem [#allocation9], %s237_s30  ;;  %s270_s7 = sshll.u32 %s266_s19, 4  ;;  %v253_v1 = vld [vmem:[%s215_s14] sm:$0x1]  ;;  %s271_s7 = int_to_ptr.hbm [resolvable:$true] %s270_s7 }
  0x62   : > { %s268_s8 = sshll.u32 %s238_s6, 4  ;;  %v254_v2 = vadd.f32 %v253_v1, %v252_v0  ;;  %s258_s4 = scalar_lea.sflag [#allocation6], %s237_s30  ;;  %s269_s8 = int_to_ptr.vmem [resolvable:$true] %s268_s8 }
  0x63   : > { %s556_s23 = sshra.s32 %s271_s7, 4  ;;  %s562_s5 = scalar_lea.hbm %s940_s3, 16  ;;  %s557_s23 = int_to_ptr.hbm [resolvable:$true] %s556_s23 }
  0x64   : > { %256 = vst.msk [vmem:[%s238_s6] sm:$0x1] %vm255_vm0, %v254_v2  ;;  %s558_s28 = scalar_lea.hbm %s557_s23, 1  ;;  %p563_p1 = scmp.lt.s32.totalorder %s557_s23, %s940_s3 }
  0x65   : > { %p559_p5 = scmp.ne.s32.totalorder %s557_s23, %s558_s28  ;;  %p564_p3 = scmp.lt.s32.totalorder %s562_s5, %s558_s28 }
  0x67   : > { %p560_p8 = pnand %p559_p5, %p777_p11  ;;  %p565_p13 = por %p564_p3, %p563_p1 }
  0x69   : > { %p561_p6 = pneg %p560_p8 }
  0x6b   : > { %p566_p10 = pnand %p565_p13, %p561_p6 }
  0x6d   : > { %569 = shalt.err (!%p566_p10)
}
  0x6e   : > { %372 = dma.vmem_to_hbm [thread:$0]  (%p777_p11), %s269_s8, 16, %s271_s7, %s258_s4  }
  0x6f PF: > { %p388_p9 = scmp.ge.s32.totalorder %s662_s24, 2  ;;  %s282_s9 = sand.u32 1, %s626_s16  }
  0x70   : > { %s283_s21 = scalar_lea.sflag [#allocation6], %s282_s9 }
  0x71   : > { %p384_p2 = pnand %p388_p9, %p782_p0 }
  0x73   : > { %p385_p12 = pneg %p384_p2 }
  0x75   : > { %621 = dma.done.wait (%p385_p12), %s283_s21, 16  }
  0x76   : > { %623 = vsyncadd (%p385_p12), %s283_s21, 4294967280  ;;  %s965_s14 = sld [smem:[#allocation16_spill]]  ;;  %p27_p11 = scmp.ge.s32.totalorder %s741_s27, 18  }
  0x77   : > { %s966_s18 = sld [smem:[#allocation18_spill]]  ;;  %s969_s16 = smov %s630_s17 }
  0x78   : > { %s967_s11 = sld [smem:[#allocation17_spill]]  ;;  %s971_s19 = smov %s642_s0 }
  0x79   : > { %s968_s23 = sld [smem:[#allocation19_spill]]  ;;  %s972_s0 = smov %s646_s20 }
  0x7a   : > { %s973_s20 = smov %s863_s13  ;;  %s974_s21 = smov %s654_s22 }
  0x7b   : > { %s976_s24 = smov %s741_s27  ;;  %29 = sbr.rel (!%p27_p11) target bundleno = 16 (0x10), region = 86 }
  0x7c   : > { %s970_s17 = smov %s965_s14 }
  0x7e   : > { %s975_s22 = smov %s967_s11 }
  0x80   :  { %288 = vsyncpa [#allocation5], 1 }
  0x81   :  { %290 = vsyncpa [#allocation5 + $0x1], 1 }
  0x82   :  { %291 = vsyncpa [#allocation8], 1 }
  0x83   :  { %293 = vsyncpa [#allocation8 + $0x1], 1 }
  0x84   :  { %294 = vsyncpa [#allocation6], 1 }
  0x85   :  { %296 = vsyncpa [#allocation6 + $0x1], 1 }

</bundles_post_ra>
